<compile_context>
chip_gen: v7x
topology: tpu7x:2x2x1
jax: 0.10.0
libtpu: 0.0.40
codegen_flags: <defaults>
</compile_context>

<pallas_src>
import jax
import jax.numpy as jnp
from jax import lax
from jax.experimental import pallas as pl
from jax.experimental.pallas import tpu as pltpu


_VMEM_LIMIT = 48 * 1024 * 1024   # safe on v7x (64 MiB phys); headroom on v5e/v6e
_MLP_LANE_CHUNK = 512            # bounds the (HIDDEN, chunk) MXU activation


# ----------------------------------------------------------------------------
# Centered orthonormal 2D FFT / IFFT (fastMRI fft2c / ifft2c) -- plain JAX glue
# TODO(synk): no Pallas FFT primitive on TPU; FFT stays in XLA (jnp.fft).
# ----------------------------------------------------------------------------
def fft2c(xr, xi):
    x = (xr + 1j * xi).astype(jnp.complex64)
    x = jnp.fft.ifftshift(x, axes=(-2, -1))
    x = jnp.fft.fft2(x, axes=(-2, -1), norm="ortho")
    x = jnp.fft.fftshift(x, axes=(-2, -1))
    return jnp.real(x).astype(jnp.float32), jnp.imag(x).astype(jnp.float32)


def ifft2c(xr, xi):
    x = (xr + 1j * xi).astype(jnp.complex64)
    x = jnp.fft.ifftshift(x, axes=(-2, -1))
    x = jnp.fft.ifft2(x, axes=(-2, -1), norm="ortho")
    x = jnp.fft.fftshift(x, axes=(-2, -1))
    return jnp.real(x).astype(jnp.float32), jnp.imag(x).astype(jnp.float32)


# ----------------------------------------------------------------------------
# Lane tiling: (padded length Lp, tile T) with T % 128 == 0 and Lp % T == 0.
# Pads L instead of ever emitting a full-extent block or a masked-store tile.
# ----------------------------------------------------------------------------
def _plan_tiles(L, cap):
    cap = max(128, cap - cap % 128)
    lp128 = -(-L // 128) * 128
    if lp128 <= cap:
        return lp128, lp128                      # single lane-dense tile
    if L % 128 == 0:
        t = cap
        while t >= 512:
            if L % t == 0:
                return L, t                      # exact tiling, no padding
            t -= 128
    Lp = -(-L // cap) * cap                      # pad up; big unmasked tiles
    return Lp, cap


def _pad_last(x, Lp):
    pad = Lp - x.shape[-1]
    if pad == 0:
        return x
    return jnp.pad(x, [(0, 0)] * (x.ndim - 1) + [(0, pad)])


# ----------------------------------------------------------------------------
# Fused sens_reduce + pointwise MLP (MXU) + sens_expand  (one HBM coil pass)
# ----------------------------------------------------------------------------
def reduce_mlp_expand_kernel(xr_ref, xi_ref, sr_ref, si_ref,
                             w1t_ref, b1_ref, w2t_ref, b2_ref,
                             er_ref, ei_ref,
                             red_ref, mlp_ref):
    # ---- sens_reduce: complex_mul(x, conj(s)).sum(coils) -> (2, T) scratch ----
    xr, xi = xr_ref[...], xi_ref[...]            # (1, C, T)
    sr, si = sr_ref[...], si_ref[...]
    red_ref[0:1, :] = jnp.sum(xr * sr + xi * si, axis=1)   # real row
    red_ref[1:2, :] = jnp.sum(xi * sr - xr * si, axis=1)   # imag row

    # ---- regularizer: per-pixel 2 -> HIDDEN -> 2 MLP on the MXU ----
    # h = relu(W1^T [rr; ri] + b1), out = W2^T h + b2; chunked along lanes so
    # the (HIDDEN, chunk) activation stays small (no spills / VMEM temporaries).
    w1t, b1 = w1t_ref[...], b1_ref[...]          # (H, 2), (H, 1)
    w2t, b2 = w2t_ref[...], b2_ref[...]          # (2, H), (2, 1)
    T = red_ref.shape[-1]
    tc = min(_MLP_LANE_CHUNK, T)
    for c in range(0, T, tc):
        ce = min(c + tc, T)
        x2 = red_ref[:, c:ce]                                          # (2, tc)
        h = jnp.maximum(
            jnp.dot(w1t, x2, preferred_element_type=jnp.float32,
                    precision=lax.Precision.HIGHEST) + b1, 0.0)        # (H, tc)
        mlp_ref[:, c:ce] = jnp.dot(
            w2t, h, preferred_element_type=jnp.float32,
            precision=lax.Precision.HIGHEST) + b2                      # (2, tc)

    mr = mlp_ref[0:1, :].reshape(1, 1, T)
    mi = mlp_ref[1:2, :].reshape(1, 1, T)

    # ---- sens_expand: complex_mul(model_out, s), broadcast over coils ----
    sr2, si2 = sr_ref[...], si_ref[...]          # re-read: bounded live ranges
    er_ref[...] = mr * sr2 - mi * si2
    ei_ref[...] = mr * si2 + mi * sr2


def reduce_mlp_expand_pallas(xr, xi, sr, si, w1, b1, w2, b2, *, tile_cap=4096):
    B, C, H, W = xr.shape
    L = H * W
    Lp, T = _plan_tiles(L, tile_cap)
    hidden = w1.shape[1]

    def prep(a):
        return _pad_last(a.reshape(B, C, L), Lp)

    coil = pl.BlockSpec((1, C, T), lambda b, j: (b, 0, j))
    wvmem = pl.BlockSpec(memory_space=pltpu.MemorySpace.VMEM)
    out = jax.ShapeDtypeStruct((B, C, Lp), jnp.float32)

    er, ei = pl.pallas_call(
        reduce_mlp_expand_kernel,
        out_shape=(out, out),
        grid=(B, Lp // T),
        in_specs=[coil, coil, coil, coil, wvmem, wvmem, wvmem, wvmem],
        out_specs=(coil, coil),
        scratch_shapes=[pltpu.VMEM((2, T), jnp.float32),   # reduced image
                        pltpu.VMEM((2, T), jnp.float32)],  # MLP output
        compiler_params=pltpu.CompilerParams(
            dimension_semantics=("parallel", "parallel"),
            vmem_limit_bytes=_VMEM_LIMIT),
    )(prep(xr), prep(xi), prep(sr), prep(si),
      w1.T, b1.reshape(hidden, 1), w2.T, b2.reshape(2, 1))

    return (er[..., :L].reshape(B, C, H, W),
            ei[..., :L].reshape(B, C, H, W))


# ----------------------------------------------------------------------------
# Data-consistency combine:  out = current - (current - ref) * mw - model_term
# (mw = consis_weight folded into the sampling mask, built in the wrapper)
# ----------------------------------------------------------------------------
def combine_kernel(cr_ref, ci_ref, refr_ref, refi_ref, mw_ref, mtr_ref, mti_ref,
                   or_ref, oi_ref):
    mw = mw_ref[...]                             # (1, 1, T), broadcasts over coils
    cr, ci = cr_ref[...], ci_ref[...]
    or_ref[...] = cr - (cr - refr_ref[...]) * mw - mtr_ref[...]
    oi_ref[...] = ci - (ci - refi_ref[...]) * mw - mti_ref[...]


def combine_pallas(cr, ci, refr, refi, mw, mtr, mti, *, tile_cap=8192):
    B, C, H, W = cr.shape
    L = H * W
    Lp, T = _plan_tiles(L, tile_cap)

    def prep(a):
        return _pad_last(a.reshape(a.shape[0], a.shape[1], L), Lp)

    coil = pl.BlockSpec((1, C, T), lambda b, j: (b, 0, j))
    msk = pl.BlockSpec((1, 1, T), lambda b, j: (0, 0, j))
    out = jax.ShapeDtypeStruct((B, C, Lp), jnp.float32)

    o_r, o_i = pl.pallas_call(
        combine_kernel,
        out_shape=(out, out),
        grid=(B, Lp // T),
        in_specs=[coil, coil, coil, coil, msk, coil, coil],
        out_specs=(coil, coil),
        # combine overwrites current_kspace functionally; reuse its HBM pages.
        input_output_aliases={0: 0, 1: 1},
        compiler_params=pltpu.CompilerParams(
            dimension_semantics=("parallel", "parallel"),
            vmem_limit_bytes=_VMEM_LIMIT),
    )(prep(cr), prep(ci), prep(refr), prep(refi),
      prep(mw), prep(mtr), prep(mti))

    return (o_r[..., :L].reshape(B, C, H, W),
            o_i[..., :L].reshape(B, C, H, W))


# ----------------------------------------------------------------------------
# Forward pass
# ----------------------------------------------------------------------------
@jax.jit
def varnet_block_forward(cr, ci, refr, refi, mask, sr, si,
                         consis_w, w1, b1, w2, b2):
    B, C, H, W = cr.shape

    # model_term = sens_expand(model(sens_reduce(current_kspace)))
    xr, xi = ifft2c(cr, ci)
    er, ei = reduce_mlp_expand_pallas(xr, xi, sr, si, w1, b1, w2, b2)
    mtr, mti = fft2c(er, ei)

    # soft data consistency: fold consis_weight into a float mask plane
    mw = jnp.broadcast_to(mask != 0, (1, 1, H, W)).astype(jnp.float32) * consis_w[0]

    return combine_pallas(cr, ci, refr, refi, mw, mtr, mti)


# ----------------------------------------------------------------------------
# Pure-JAX reference for verification
# ----------------------------------------------------------------------------
def reference_forward(cr, ci, refr, refi, mask, sr, si, consis_w, w1, b1, w2, b2):
    xr, xi = ifft2c(cr, ci)
    red_r = jnp.sum(xr * sr + xi * si, axis=1, keepdims=True)
    red_i = jnp.sum(xi * sr - xr * si, axis=1, keepdims=True)
    x = jnp.stack([red_r.reshape(-1), red_i.reshape(-1)], axis=-1)
    h = jnp.maximum(x @ w1 + b1, 0.0)
    o = h @ w2 + b2
    mr = o[:, 0].reshape(red_r.shape)
    mi = o[:, 1].reshape(red_i.shape)
    er = mr * sr - mi * si
    ei = mr * si + mi * sr
    mtr, mti = fft2c(er, ei)
    m = mask != 0
    w = consis_w[0]
    dcr = jnp.where(m, cr - refr, 0.0) * w
    dci = jnp.where(m, ci - refi, 0.0) * w
    return cr - dcr - mtr, ci - dci - mti


# ----------------------------------------------------------------------------
# Main
# ----------------------------------------------------------------------------
if __name__ == "__main__":
    B, C, H, W = 2, 4, 16, 16
    HIDDEN = 32

    key = jax.random.PRNGKey(0)
    ks = jax.random.split(key, 12)

    cr = jax.random.normal(ks[0], (B, C, H, W), jnp.float32)
    ci = jax.random.normal(ks[1], (B, C, H, W), jnp.float32)
    refr = jax.random.normal(ks[2], (B, C, H, W), jnp.float32)
    refi = jax.random.normal(ks[3], (B, C, H, W), jnp.float32)
    sr = jax.random.normal(ks[4], (B, C, H, W), jnp.float32)
    si = jax.random.normal(ks[5], (B, C, H, W), jnp.float32)
    # undersampling mask over k-space columns (torch shape (1,1,1,W,1))
    mask = (jax.random.uniform(ks[6], (1, 1, 1, W)) > 0.5).astype(jnp.int32)

    # parameters: consis_weight = torch.ones(1); synthetic regularizer weights
    consis_w = jnp.ones((1,), jnp.float32)
    w1 = 0.1 * jax.random.normal(ks[7], (2, HIDDEN), jnp.float32)
    b1 = 0.01 * jax.random.normal(ks[8], (HIDDEN,), jnp.float32)
    w2 = 0.1 * jax.random.normal(ks[9], (HIDDEN, 2), jnp.float32)
    b2 = 0.01 * jax.random.normal(ks[10], (2,), jnp.float32)

    out_r, out_i = varnet_block_forward(
        cr, ci, refr, refi, mask, sr, si, consis_w, w1, b1, w2, b2)
    jax.block_until_ready((out_r, out_i))

    ref_r, ref_i = reference_forward(
        cr, ci, refr, refi, mask, sr, si, consis_w, w1, b1, w2, b2)

    assert jnp.allclose(out_r, ref_r, atol=1e-4, rtol=1e-4)
    assert jnp.allclose(out_i, ref_i, atol=1e-4, rtol=1e-4)

    print("KERNEL_OK")
</pallas_src>

<mosaic_0001>
module attributes {stable_mosaic.version = 11 : i64} {
  func.func @reduce_mlp_expand_kernel(%arg0: i32, %arg1: i32, %arg2: memref<1x4x256xf32, #tpu.memory_space<vmem>>, %arg3: memref<1x4x256xf32, #tpu.memory_space<vmem>>, %arg4: memref<1x4x256xf32, #tpu.memory_space<vmem>>, %arg5: memref<1x4x256xf32, #tpu.memory_space<vmem>>, %arg6: memref<32x2xf32, #tpu.memory_space<vmem>>, %arg7: memref<32x1xf32, #tpu.memory_space<vmem>>, %arg8: memref<2x32xf32, #tpu.memory_space<vmem>>, %arg9: memref<2x1xf32, #tpu.memory_space<vmem>>, %arg10: memref<1x4x256xf32, #tpu.memory_space<vmem>>, %arg11: memref<1x4x256xf32, #tpu.memory_space<vmem>>, %arg12: memref<2x256xf32, #tpu.memory_space<vmem>>, %arg13: memref<2x256xf32, #tpu.memory_space<vmem>>) attributes {dimension_semantics = [#tpu.dimension_semantics<parallel>, #tpu.dimension_semantics<parallel>], iteration_bounds = array<i64: 2, 1>, scalar_prefetch = 0 : i64, scratch_operands = 2 : i64, tpu.core_type = #tpu.core_type<tc>, window_params = [{transform_indices = @transform_0, window_bounds = array<i64: 1, 4, 256>}, {transform_indices = @transform_1, window_bounds = array<i64: 1, 4, 256>}, {transform_indices = @transform_2, window_bounds = array<i64: 1, 4, 256>}, {transform_indices = @transform_3, window_bounds = array<i64: 1, 4, 256>}, {pipeline_mode = #tpu.pipeline_mode<synchronous>, transform_indices = @transform_4, window_bounds = array<i64: 32, 2>}, {pipeline_mode = #tpu.pipeline_mode<synchronous>, transform_indices = @transform_5, window_bounds = array<i64: 32, 1>}, {pipeline_mode = #tpu.pipeline_mode<synchronous>, transform_indices = @transform_6, window_bounds = array<i64: 2, 32>}, {pipeline_mode = #tpu.pipeline_mode<synchronous>, transform_indices = @transform_7, window_bounds = array<i64: 2, 1>}, {transform_indices = @transform_8, window_bounds = array<i64: 1, 4, 256>}, {transform_indices = @transform_9, window_bounds = array<i64: 1, 4, 256>}]} {
    %c0 = arith.constant 0 : index
    %c0_0 = arith.constant 0 : index
    %c0_1 = arith.constant 0 : index
    %0 = vector.load %arg2[%c0, %c0_0, %c0_1] : memref<1x4x256xf32, #tpu.memory_space<vmem>>, vector<1x4x256xf32>
    %c0_2 = arith.constant 0 : index
    %c0_3 = arith.constant 0 : index
    %c0_4 = arith.constant 0 : index
    %1 = vector.load %arg3[%c0_2, %c0_3, %c0_4] : memref<1x4x256xf32, #tpu.memory_space<vmem>>, vector<1x4x256xf32>
    %c0_5 = arith.constant 0 : index
    %c0_6 = arith.constant 0 : index
    %c0_7 = arith.constant 0 : index
    %2 = vector.load %arg4[%c0_5, %c0_6, %c0_7] : memref<1x4x256xf32, #tpu.memory_space<vmem>>, vector<1x4x256xf32>
    %c0_8 = arith.constant 0 : index
    %c0_9 = arith.constant 0 : index
    %c0_10 = arith.constant 0 : index
    %3 = vector.load %arg5[%c0_8, %c0_9, %c0_10] : memref<1x4x256xf32, #tpu.memory_space<vmem>>, vector<1x4x256xf32>
    %4 = arith.mulf %0, %2 : vector<1x4x256xf32>
    %5 = arith.mulf %1, %3 : vector<1x4x256xf32>
    %6 = arith.addf %4, %5 : vector<1x4x256xf32>
    %cst = arith.constant dense<0.000000e+00> : vector<1x256xf32>
    %7 = vector.multi_reduction <add>, %6, %cst [1] : vector<1x4x256xf32> to vector<1x256xf32>
    %c0_11 = arith.constant 0 : index
    %c0_12 = arith.constant 0 : index
    %8 = vector.load %arg12[%c0_11, %c0_12] : memref<2x256xf32, #tpu.memory_space<vmem>>, vector<1x256xf32>
    tpu.vector_store %arg12[%c0_11, %c0_12], %7 {strides = array<i32>} : memref<2x256xf32, #tpu.memory_space<vmem>>, vector<1x256xf32>,
    %9 = arith.mulf %1, %2 : vector<1x4x256xf32>
    %10 = arith.mulf %0, %3 : vector<1x4x256xf32>
    %11 = arith.subf %9, %10 : vector<1x4x256xf32>
    %cst_13 = arith.constant dense<0.000000e+00> : vector<1x256xf32>
    %12 = vector.multi_reduction <add>, %11, %cst_13 [1] : vector<1x4x256xf32> to vector<1x256xf32>
    %c1 = arith.constant 1 : index
    %c0_14 = arith.constant 0 : index
    %13 = vector.load %arg12[%c1, %c0_14] : memref<2x256xf32, #tpu.memory_space<vmem>>, vector<1x256xf32>
    tpu.vector_store %arg12[%c1, %c0_14], %12 {strides = array<i32>} : memref<2x256xf32, #tpu.memory_space<vmem>>, vector<1x256xf32>,
    %c0_15 = arith.constant 0 : index
    %c0_16 = arith.constant 0 : index
    %14 = vector.load %arg6[%c0_15, %c0_16] : memref<32x2xf32, #tpu.memory_space<vmem>>, vector<32x2xf32>
    %c0_17 = arith.constant 0 : index
    %c0_18 = arith.constant 0 : index
    %15 = vector.load %arg7[%c0_17, %c0_18] : memref<32x1xf32, #tpu.memory_space<vmem>>, vector<32x1xf32>
    %c0_19 = arith.constant 0 : index
    %c0_20 = arith.constant 0 : index
    %16 = vector.load %arg8[%c0_19, %c0_20] : memref<2x32xf32, #tpu.memory_space<vmem>>, vector<2x32xf32>
    %c0_21 = arith.constant 0 : index
    %c0_22 = arith.constant 0 : index
    %17 = vector.load %arg9[%c0_21, %c0_22] : memref<2x1xf32, #tpu.memory_space<vmem>>, vector<2x1xf32>
    %c0_23 = arith.constant 0 : index
    %c0_24 = arith.constant 0 : index
    %18 = vector.load %arg12[%c0_23, %c0_24] : memref<2x256xf32, #tpu.memory_space<vmem>>, vector<2x256xf32>
    %cst_25 = arith.constant dense<0.000000e+00> : vector<32x256xf32>
    %19 = tpu.matmul %14, %18, %cst_25 {dimension_numbers = #tpu.dot_dimension_numbers<[1], [0], [0], [1], [0, 0, 1, 1], [], []>, precision = #tpu.contract_precision<fp32>} : vector<32x2xf32>, vector<2x256xf32>, vector<32x256xf32> -> vector<32x256xf32>
    %20 = vector.broadcast %15 : vector<32x1xf32> to vector<32x256xf32>
    %21 = arith.addf %19, %20 : vector<32x256xf32>
    %cst_26 = arith.constant 0.000000e+00 : f32
    %22 = vector.broadcast %cst_26 : f32 to vector<32x256xf32>
    %23 = arith.maximumf %21, %22 : vector<32x256xf32>
    %cst_27 = arith.constant dense<0.000000e+00> : vector<2x256xf32>
    %24 = tpu.matmul %16, %23, %cst_27 {dimension_numbers = #tpu.dot_dimension_numbers<[1], [0], [0], [1], [0, 0, 1, 1], [], []>, precision = #tpu.contract_precision<fp32>} : vector<2x32xf32>, vector<32x256xf32>, vector<2x256xf32> -> vector<2x256xf32>
    %25 = vector.broadcast %17 : vector<2x1xf32> to vector<2x256xf32>
    %26 = arith.addf %24, %25 : vector<2x256xf32>
    %c0_28 = arith.constant 0 : index
    %c0_29 = arith.constant 0 : index
    %27 = vector.load %arg13[%c0_28, %c0_29] : memref<2x256xf32, #tpu.memory_space<vmem>>, vector<2x256xf32>
    tpu.vector_store %arg13[%c0_28, %c0_29], %26 {strides = array<i32>} : memref<2x256xf32, #tpu.memory_space<vmem>>, vector<2x256xf32>,
    %c0_30 = arith.constant 0 : index
    %c0_31 = arith.constant 0 : index
    %28 = vector.load %arg13[%c0_30, %c0_31] : memref<2x256xf32, #tpu.memory_space<vmem>>, vector<1x256xf32>
    %29 = vector.shape_cast %28 : vector<1x256xf32> to vector<1x1x256xf32>
    %c1_32 = arith.constant 1 : index
    %c0_33 = arith.constant 0 : index
    %30 = vector.load %arg13[%c1_32, %c0_33] : memref<2x256xf32, #tpu.memory_space<vmem>>, vector<1x256xf32>
    %31 = vector.shape_cast %30 : vector<1x256xf32> to vector<1x1x256xf32>
    %c0_34 = arith.constant 0 : index
    %c0_35 = arith.constant 0 : index
    %c0_36 = arith.constant 0 : index
    %32 = vector.load %arg4[%c0_34, %c0_35, %c0_36] : memref<1x4x256xf32, #tpu.memory_space<vmem>>, vector<1x4x256xf32>
    %c0_37 = arith.constant 0 : index
    %c0_38 = arith.constant 0 : index
    %c0_39 = arith.constant 0 : index
    %33 = vector.load %arg5[%c0_37, %c0_38, %c0_39] : memref<1x4x256xf32, #tpu.memory_space<vmem>>, vector<1x4x256xf32>
    %34 = vector.broadcast %29 : vector<1x1x256xf32> to vector<1x4x256xf32>
    %35 = arith.mulf %34, %32 : vector<1x4x256xf32>
    %36 = vector.broadcast %31 : vector<1x1x256xf32> to vector<1x4x256xf32>
    %37 = arith.mulf %36, %33 : vector<1x4x256xf32>
    %38 = arith.subf %35, %37 : vector<1x4x256xf32>
    %c0_40 = arith.constant 0 : index
    %c0_41 = arith.constant 0 : index
    %c0_42 = arith.constant 0 : index
    %39 = vector.load %arg10[%c0_40, %c0_41, %c0_42] : memref<1x4x256xf32, #tpu.memory_space<vmem>>, vector<1x4x256xf32>
    tpu.vector_store %arg10[%c0_40, %c0_41, %c0_42], %38 {strides = array<i32>} : memref<1x4x256xf32, #tpu.memory_space<vmem>>, vector<1x4x256xf32>,
    %40 = vector.broadcast %29 : vector<1x1x256xf32> to vector<1x4x256xf32>
    %41 = arith.mulf %40, %33 : vector<1x4x256xf32>
    %42 = vector.broadcast %31 : vector<1x1x256xf32> to vector<1x4x256xf32>
    %43 = arith.mulf %42, %32 : vector<1x4x256xf32>
    %44 = arith.addf %41, %43 : vector<1x4x256xf32>
    %c0_43 = arith.constant 0 : index
    %c0_44 = arith.constant 0 : index
    %c0_45 = arith.constant 0 : index
    %45 = vector.load %arg11[%c0_43, %c0_44, %c0_45] : memref<1x4x256xf32, #tpu.memory_space<vmem>>, vector<1x4x256xf32>
    tpu.vector_store %arg11[%c0_43, %c0_44, %c0_45], %44 {strides = array<i32>} : memref<1x4x256xf32, #tpu.memory_space<vmem>>, vector<1x4x256xf32>,
    return
  }
  func.func @transform_0(%arg0: i32, %arg1: i32) -> (i32, i32, i32) {
    %c0_i32 = arith.constant 0 : i32
    %c0_i32_0 = arith.constant 0 : i32
    return %arg0, %c0_i32, %arg1 : i32, i32, i32
  }
  func.func @transform_1(%arg0: i32, %arg1: i32) -> (i32, i32, i32) {
    %c0_i32 = arith.constant 0 : i32
    %c0_i32_0 = arith.constant 0 : i32
    return %arg0, %c0_i32, %arg1 : i32, i32, i32
  }
  func.func @transform_2(%arg0: i32, %arg1: i32) -> (i32, i32, i32) {
    %c0_i32 = arith.constant 0 : i32
    %c0_i32_0 = arith.constant 0 : i32
    return %arg0, %c0_i32, %arg1 : i32, i32, i32
  }
  func.func @transform_3(%arg0: i32, %arg1: i32) -> (i32, i32, i32) {
    %c0_i32 = arith.constant 0 : i32
    %c0_i32_0 = arith.constant 0 : i32
    return %arg0, %c0_i32, %arg1 : i32, i32, i32
  }
  func.func @transform_4(%arg0: i32, %arg1: i32) -> (i32, i32) {
    %c0_i32 = arith.constant 0 : i32
    %c0_i32_0 = arith.constant 0 : i32
    %c0_i32_1 = arith.constant 0 : i32
    return %c0_i32, %c0_i32_0 : i32, i32
  }
  func.func @transform_5(%arg0: i32, %arg1: i32) -> (i32, i32) {
    %c0_i32 = arith.constant 0 : i32
    %c0_i32_0 = arith.constant 0 : i32
    %c0_i32_1 = arith.constant 0 : i32
    return %c0_i32, %c0_i32_0 : i32, i32
  }
  func.func @transform_6(%arg0: i32, %arg1: i32) -> (i32, i32) {
    %c0_i32 = arith.constant 0 : i32
    %c0_i32_0 = arith.constant 0 : i32
    %c0_i32_1 = arith.constant 0 : i32
    return %c0_i32, %c0_i32_0 : i32, i32
  }
  func.func @transform_7(%arg0: i32, %arg1: i32) -> (i32, i32) {
    %c0_i32 = arith.constant 0 : i32
    %c0_i32_0 = arith.constant 0 : i32
    %c0_i32_1 = arith.constant 0 : i32
    return %c0_i32, %c0_i32_0 : i32, i32
  }
  func.func @transform_8(%arg0: i32, %arg1: i32) -> (i32, i32, i32) {
    %c0_i32 = arith.constant 0 : i32
    %c0_i32_0 = arith.constant 0 : i32
    return %arg0, %c0_i32, %arg1 : i32, i32, i32
  }
  func.func @transform_9(%arg0: i32, %arg1: i32) -> (i32, i32, i32) {
    %c0_i32 = arith.constant 0 : i32
    %c0_i32_0 = arith.constant 0 : i32
    return %arg0, %c0_i32, %arg1 : i32, i32, i32
  }
}

module attributes {stable_mosaic.version = 11 : i64} {
  func.func @combine_kernel(%arg0: i32, %arg1: i32, %arg2: memref<1x4x256xf32, #tpu.memory_space<vmem>>, %arg3: memref<1x4x256xf32, #tpu.memory_space<vmem>>, %arg4: memref<1x4x256xf32, #tpu.memory_space<vmem>>, %arg5: memref<1x4x256xf32, #tpu.memory_space<vmem>>, %arg6: memref<1x1x256xf32, #tpu.memory_space<vmem>>, %arg7: memref<1x4x256xf32, #tpu.memory_space<vmem>>, %arg8: memref<1x4x256xf32, #tpu.memory_space<vmem>>, %arg9: memref<1x4x256xf32, #tpu.memory_space<vmem>>, %arg10: memref<1x4x256xf32, #tpu.memory_space<vmem>>) attributes {dimension_semantics = [#tpu.dimension_semantics<parallel>, #tpu.dimension_semantics<parallel>], iteration_bounds = array<i64: 2, 1>, scalar_prefetch = 0 : i64, scratch_operands = 0 : i64, tpu.core_type = #tpu.core_type<tc>, window_params = [{transform_indices = @transform_0, window_bounds = array<i64: 1, 4, 256>}, {transform_indices = @transform_1, window_bounds = array<i64: 1, 4, 256>}, {transform_indices = @transform_2, window_bounds = array<i64: 1, 4, 256>}, {transform_indices = @transform_3, window_bounds = array<i64: 1, 4, 256>}, {transform_indices = @transform_4, window_bounds = array<i64: 1, 1, 256>}, {transform_indices = @transform_5, window_bounds = array<i64: 1, 4, 256>}, {transform_indices = @transform_6, window_bounds = array<i64: 1, 4, 256>}, {transform_indices = @transform_7, window_bounds = array<i64: 1, 4, 256>}, {transform_indices = @transform_8, window_bounds = array<i64: 1, 4, 256>}]} {
    %c0 = arith.constant 0 : index
    %c0_0 = arith.constant 0 : index
    %c0_1 = arith.constant 0 : index
    %0 = vector.load %arg6[%c0, %c0_0, %c0_1] : memref<1x1x256xf32, #tpu.memory_space<vmem>>, vector<1x1x256xf32>
    %c0_2 = arith.constant 0 : index
    %c0_3 = arith.constant 0 : index
    %c0_4 = arith.constant 0 : index
    %1 = vector.load %arg2[%c0_2, %c0_3, %c0_4] : memref<1x4x256xf32, #tpu.memory_space<vmem>>, vector<1x4x256xf32>
    %c0_5 = arith.constant 0 : index
    %c0_6 = arith.constant 0 : index
    %c0_7 = arith.constant 0 : index
    %2 = vector.load %arg3[%c0_5, %c0_6, %c0_7] : memref<1x4x256xf32, #tpu.memory_space<vmem>>, vector<1x4x256xf32>
    %c0_8 = arith.constant 0 : index
    %c0_9 = arith.constant 0 : index
    %c0_10 = arith.constant 0 : index
    %3 = vector.load %arg4[%c0_8, %c0_9, %c0_10] : memref<1x4x256xf32, #tpu.memory_space<vmem>>, vector<1x4x256xf32>
    %4 = arith.subf %1, %3 : vector<1x4x256xf32>
    %5 = vector.broadcast %0 : vector<1x1x256xf32> to vector<1x4x256xf32>
    %6 = arith.mulf %4, %5 : vector<1x4x256xf32>
    %7 = arith.subf %1, %6 : vector<1x4x256xf32>
    %c0_11 = arith.constant 0 : index
    %c0_12 = arith.constant 0 : index
    %c0_13 = arith.constant 0 : index
    %8 = vector.load %arg7[%c0_11, %c0_12, %c0_13] : memref<1x4x256xf32, #tpu.memory_space<vmem>>, vector<1x4x256xf32>
    %9 = arith.subf %7, %8 : vector<1x4x256xf32>
    %c0_14 = arith.constant 0 : index
    %c0_15 = arith.constant 0 : index
    %c0_16 = arith.constant 0 : index
    %10 = vector.load %arg9[%c0_14, %c0_15, %c0_16] : memref<1x4x256xf32, #tpu.memory_space<vmem>>, vector<1x4x256xf32>
    tpu.vector_store %arg9[%c0_14, %c0_15, %c0_16], %9 {strides = array<i32>} : memref<1x4x256xf32, #tpu.memory_space<vmem>>, vector<1x4x256xf32>,
    %c0_17 = arith.constant 0 : index
    %c0_18 = arith.constant 0 : index
    %c0_19 = arith.constant 0 : index
    %11 = vector.load %arg5[%c0_17, %c0_18, %c0_19] : memref<1x4x256xf32, #tpu.memory_space<vmem>>, vector<1x4x256xf32>
    %12 = arith.subf %2, %11 : vector<1x4x256xf32>
    %13 = vector.broadcast %0 : vector<1x1x256xf32> to vector<1x4x256xf32>
    %14 = arith.mulf %12, %13 : vector<1x4x256xf32>
    %15 = arith.subf %2, %14 : vector<1x4x256xf32>
    %c0_20 = arith.constant 0 : index
    %c0_21 = arith.constant 0 : index
    %c0_22 = arith.constant 0 : index
    %16 = vector.load %arg8[%c0_20, %c0_21, %c0_22] : memref<1x4x256xf32, #tpu.memory_space<vmem>>, vector<1x4x256xf32>
    %17 = arith.subf %15, %16 : vector<1x4x256xf32>
    %c0_23 = arith.constant 0 : index
    %c0_24 = arith.constant 0 : index
    %c0_25 = arith.constant 0 : index
    %18 = vector.load %arg10[%c0_23, %c0_24, %c0_25] : memref<1x4x256xf32, #tpu.memory_space<vmem>>, vector<1x4x256xf32>
    tpu.vector_store %arg10[%c0_23, %c0_24, %c0_25], %17 {strides = array<i32>} : memref<1x4x256xf32, #tpu.memory_space<vmem>>, vector<1x4x256xf32>,
    return
  }
  func.func @transform_0(%arg0: i32, %arg1: i32) -> (i32, i32, i32) {
    %c0_i32 = arith.constant 0 : i32
    %c0_i32_0 = arith.constant 0 : i32
    return %arg0, %c0_i32, %arg1 : i32, i32, i32
  }
  func.func @transform_1(%arg0: i32, %arg1: i32) -> (i32, i32, i32) {
    %c0_i32 = arith.constant 0 : i32
    %c0_i32_0 = arith.constant 0 : i32
    return %arg0, %c0_i32, %arg1 : i32, i32, i32
  }
  func.func @transform_2(%arg0: i32, %arg1: i32) -> (i32, i32, i32) {
    %c0_i32 = arith.constant 0 : i32
    %c0_i32_0 = arith.constant 0 : i32
    return %arg0, %c0_i32, %arg1 : i32, i32, i32
  }
  func.func @transform_3(%arg0: i32, %arg1: i32) -> (i32, i32, i32) {
    %c0_i32 = arith.constant 0 : i32
    %c0_i32_0 = arith.constant 0 : i32
    return %arg0, %c0_i32, %arg1 : i32, i32, i32
  }
  func.func @transform_4(%arg0: i32, %arg1: i32) -> (i32, i32, i32) {
    %c0_i32 = arith.constant 0 : i32
    %c0_i32_0 = arith.constant 0 : i32
    %c0_i32_1 = arith.constant 0 : i32
    return %c0_i32, %c0_i32_0, %arg1 : i32, i32, i32
  }
  func.func @transform_5(%arg0: i32, %arg1: i32) -> (i32, i32, i32) {
    %c0_i32 = arith.constant 0 : i32
    %c0_i32_0 = arith.constant 0 : i32
    return %arg0, %c0_i32, %arg1 : i32, i32, i32
  }
  func.func @transform_6(%arg0: i32, %arg1: i32) -> (i32, i32, i32) {
    %c0_i32 = arith.constant 0 : i32
    %c0_i32_0 = arith.constant 0 : i32
    return %arg0, %c0_i32, %arg1 : i32, i32, i32
  }
  func.func @transform_7(%arg0: i32, %arg1: i32) -> (i32, i32, i32) {
    %c0_i32 = arith.constant 0 : i32
    %c0_i32_0 = arith.constant 0 : i32
    return %arg0, %c0_i32, %arg1 : i32, i32, i32
  }
  func.func @transform_8(%arg0: i32, %arg1: i32) -> (i32, i32, i32) {
    %c0_i32 = arith.constant 0 : i32
    %c0_i32_0 = arith.constant 0 : i32
    return %arg0, %c0_i32, %arg1 : i32, i32, i32
  }
}

</mosaic_0001>

<bundles_post_ra>
// kernel: varnet_block_forward.3
= control target key start
LH: loop header
LB: loop body
LE: loop exit
PB: predicated region body
PF: predicated region fallthrough
CT: control target
= control target key end

     0   :  { %s960_s27 = smov 0   ;;  %s962_s28 = smov 0   ;;  %s1024_s0 = inlined_call_operand.vmem [shape: f32[2,4,256], index: 0, kind: input, shape index: {}, may-alias: {0,7}]   ;;  %s1025_s1 = inlined_call_operand.vmem [shape: f32[2,4,256], index: 1, kind: input, shape index: {}, may-alias: {1,8}]   ;;  %s1026_s2 = inlined_call_operand.vmem [shape: f32[2,4,256], index: 2, kind: input, shape index: {}]   ;;  %s1027_s3 = inlined_call_operand.vmem [shape: f32[2,4,256], index: 3, kind: input, shape index: {}]   ;;  %s1028_s4 = inlined_call_operand.vmem [shape: f32[1,1,256], index: 4, kind: input, shape index: {}]   ;;  %s1029_s5 = inlined_call_operand.vmem [shape: f32[2,4,256], index: 5, kind: input, shape index: {}]   ;;  %s1030_s6 = inlined_call_operand.vmem [shape: f32[2,4,256], index: 6, kind: input, shape index: {}]   ;;  %s1031_s7 = inlined_call_operand.vmem [shape: f32[2,4,256], index: 7, kind: output, shape index: {0}, may-alias: {0,7}]   ;;  %s1032_s8 = inlined_call_operand.vmem [shape: f32[2,4,256], index: 8, kind: output, shape index: {1}, may-alias: {1,8}]  }
   0x1   :  { %s964_s29 = smov 0  }
   0x2 LB: > { %s31_s30 = sadd.s32 1, %s909_s28  ;;  %p840_p0 = scmp.ge.s32.totalorder %s913_s29, 1  ;;  %s913_s29 = sphi %s964_s29, %s19_s29   ;;  %s909_s28 = sphi %s962_s28, %s1034_s28   ;;  %s905_s27 = sphi %s960_s27, %s1033_s27  }
   0x3   : > { %p33_p1 = scmp.ge.s32.totalorder %s31_s30, 2  ;;  %p383_p2 = scmp.lt.s32.totalorder %s913_s29, 3 }
   0x5   : > { %s1036_s30 = smov (%p33_p1, %s31_s30), 0  ;;  %p384_p3 = pnand %p840_p0, %p383_p2 }
   0x6   : > { %p484_p4 = scmp.lt.s32.totalorder (!%p384_p3), %s905_s27, 1  ;;  %v574_v0 = vlaneseq (!%p384_p3)  ;;  %v568_v2 = vld [vmem:[%s1028_s4] sm:$0x3] (!%p384_p3) }
   0x7   : > { %387 = sbr.rel (%p384_p3) target bundleno = 30 (0x1e), region = 48 }
   0x8   : > { %v575_v1 = vshrl.u32 (!%p384_p3), %v574_v0, 7 }
   0xa   : > { %v576_v3 = vsub.s32 (!%p384_p3), 0, %v575_v1  ;;  %v580_v4 = vsub.s32 (!%p384_p3), 1, %v575_v1 }
   0xc   : > { %v577_v7 = vrot.slane (!%p384_p3), %v568_v2, %v576_v3  ;;  %v581_v8 = vrot.slane (!%p384_p3), %v568_v2, %v580_v4 }
   0xe   : > { %s1038_s27 = smov (!%p484_p4, %s905_s27), 1  ;;  %v582_v10 = vcombine.low %v577_v7, %v581_v8 }
   0xf   : > { %s981_s11 = sshll.u32 %s1038_s27, 3 }
  0x10   : > { %s491_s14 = scalar_lea.vmem %s1024_s0, %s981_s11  ;;  %s511_s17 = scalar_lea.vmem %s1026_s2, %s981_s11 }
  0x11   : > { %v569_v5 = vld [vmem:[%s491_s14] sm:$0xff]  ;;  %s501_s20 = scalar_lea.vmem %s1025_s1, %s981_s11  ;;  %s521_s23 = scalar_lea.vmem %s1027_s3, %s981_s11 }
  0x12   : > { %v571_v6 = vld [vmem:[%s511_s17] sm:$0xff]  ;;  %s536_s26 = scalar_lea.vmem %s1029_s5, %s981_s11  ;;  %s546_s10 = scalar_lea.vmem %s1030_s6, %s981_s11 }
  0x13   : > { %v572_v9 = vsub.f32 %v569_v5, %v571_v6  ;;  %v570_v11 = vld [vmem:[%s501_s20] sm:$0xff]  ;;  %s556_s14 = scalar_lea.vmem %s1031_s7, %s981_s11  ;;  %s566_s17 = scalar_lea.vmem %s1032_s8, %s981_s11 }
  0x14   : > { %v589_v12 = vld [vmem:[%s521_s23] sm:$0xff] }
  0x15   : > { %v590_v13 = vsub.f32 %v570_v11, %v589_v12  ;;  %v584_v14 = vmul.f32 %v582_v10, %v572_v9  ;;  %v586_v15 = vld [vmem:[%s536_s26] sm:$0xff] }
  0x16   : > { %v593_v18 = vld [vmem:[%s546_s10] sm:$0xff] }
  0x17   : > { %v591_v16 = vmul.f32 %v590_v13, %v582_v10  ;;  %v585_v17 = vsub.f32 %v569_v5, %v584_v14 }
  0x19   : > { %v592_v19 = vsub.f32 %v570_v11, %v591_v16  ;;  %v587_v20 = vsub.f32 %v585_v17, %v586_v15 }
  0x1b   : > { %v594_v21 = vsub.f32 %v592_v19, %v593_v18  ;;  %588 = vst [vmem:[%s556_s14] sm:$0xff] %v587_v20 }
  0x1d   : > { %595 = vst [vmem:[%s566_s17] sm:$0xff] %v594_v21 }
  0x1e PF: > { %s19_s29 = sadd.s32 1, %s913_s29   ;;  %s1033_s27 = smov %s909_s28 }
  0x1f   : > { %p16_p5 = scmp.ge.s32.totalorder %s19_s29, 4   ;;  %s1034_s28 = smov %s1036_s30 }
  0x21   :  { %18 = sbr.rel (!%p16_p5) target bundleno = 2 (0x2), region = 108 }

// kernel: varnet_block_forward.2
= control target key start
LH: loop header
LB: loop body
LE: loop exit
PB: predicated region body
PF: predicated region fallthrough
CT: control target
= control target key end

     0   :  { %s2323_s30 = smov 0   ;;  %s2325_s10 = smov 0   ;;  %s2557_s0 = inlined_call_operand.vmem [shape: f32[2,4,256], index: 0, kind: input, shape index: {}]   ;;  %s2558_s1 = inlined_call_operand.vmem [shape: f32[2,4,256], index: 1, kind: input, shape index: {}]   ;;  %s2559_s2 = inlined_call_operand.vmem [shape: f32[2,4,256], index: 2, kind: input, shape index: {}]   ;;  %s2560_s3 = inlined_call_operand.vmem [shape: f32[2,4,256], index: 3, kind: input, shape index: {}]   ;;  %s2561_s4 = inlined_call_operand.vmem [shape: f32[32,2], index: 4, kind: input, shape index: {}]   ;;  %s2562_s5 = inlined_call_operand.vmem [shape: f32[32,1], index: 5, kind: input, shape index: {}]   ;;  %s2563_s6 = inlined_call_operand.vmem [shape: f32[2,32], index: 6, kind: input, shape index: {}]   ;;  %s2564_s7 = inlined_call_operand.vmem [shape: f32[2,1], index: 7, kind: input, shape index: {}]   ;;  %s2565_s8 = inlined_call_operand.vmem [shape: f32[2,4,256], index: 8, kind: output, shape index: {0}]   ;;  %s2566_s9 = inlined_call_operand.vmem [shape: f32[2,4,256], index: 9, kind: output, shape index: {1}]  }
   0x1   :  { %s2327_s11 = smov 0  }
   0x2 LB: > { %s32_s12 = sadd.s32 1, %s2264_s10  ;;  %p2084_p0 = scmp.ge.s32.totalorder %s2268_s11, 1  ;;  %s2268_s11 = sphi %s2327_s11, %s20_s11   ;;  %s2264_s10 = sphi %s2325_s10, %s2568_s10   ;;  %s2260_s30 = sphi %s2323_s30, %s2567_s30  }
   0x3   : > { %p34_p1 = scmp.ge.s32.totalorder %s32_s12, 2  ;;  %p364_p2 = scmp.lt.s32.totalorder %s2268_s11, 3 }
   0x5   : > { %s2570_s12 = smov (%p34_p1, %s32_s12), 0  ;;  %p365_p3 = pnand %p2084_p0, %p364_p2 }
   0x6   : > { %p445_p4 = scmp.lt.s32.totalorder (!%p365_p3), %s2260_s30, 1  ;;  %v2270_v0 = vmov (!%p365_p3), 0.0   ;;  %v596_v1 = vld [vmem:[%s2562_s5] sm:$0xff] (!%p365_p3)  ;;  %v2271_v2 = vmov (!%p365_p3), 0   ;;  %v598_v3 = vld [vmem:[%s2562_s5 + $0x10] sm:$0xff] (!%p365_p3)  ;;  %v597_v4 = vld [vmem:[%s2562_s5 + $0x8] sm:$0xff] (!%p365_p3)  ;;  %v535_v31 = vlaneseq (!%p365_p3) }
   0x7   : > { %368 = sbr.rel (%p365_p3) target bundleno = 637 (0x27d), region = 52  ;;  %835 = vmatprep.mubr.f32.mxu0 (!%p365_p3), %v2270_v0  ;;  %716 = vmatprep.mubr.f32.mxu1 (!%p365_p3), %v2270_v0  ;;  %v599_v7 = vld [vmem:[%s2562_s5 + $0x18] sm:$0xff] (!%p365_p3)  ;;  %vm514_vm0 = vcmask (!%p365_p3), 1043456   ;;  %v601_v14 = vld [vmem:[%s2564_s7] sm:$0x3] (!%p365_p3)  ;;  %vm632_vm1 = vcmask (!%p365_p3), 15360  }
   0x8   : > { %2244 = vset.pattern.permute.xlu0 (!%p365_p3), %v2271_v2  ;;  %2245 = vset.pattern.permute.xlu1 (!%p365_p3), %v2271_v2  ;;  %v2272_v29 = vmov (!%p365_p3), 1966171168   ;;  %v2384_v41 = vshrl.u32 (!%p365_p3), %v535_v31, 7  ;;  %v592_v53 = vld [vmem:[%s2561_s4] sm:$0xff] (!%p365_p3)  ;;  %v593_v56 = vld [vmem:[%s2561_s4 + $0x8] sm:$0xff] (!%p365_p3)  ;;  %vm549_vm2 = vcmp.lt.s32.totalorder (!%p365_p3), %v535_v31, 256 }
   0x9   : > { %605 = vperm.xlu0 (!%p365_p3), %2244, %v596_v1   ;;  %615 = vperm.xlu1 (!%p365_p3), %2245, %v598_v3   ;;  %v533_v30 = vunpack.c.l.s4 (!%p365_p3), %v2272_v29  ;;  %v634_v59 = vsel (!%p365_p3), %vm632_vm1, %v592_v53, 0  ;;  %v637_v62 = vsel (!%p365_p3), %vm632_vm1, %v593_v56, 0  ;;  %v594_v1 = vld [vmem:[%s2561_s4 + $0x10] sm:$0xff] (!%p365_p3)  ;;  %vm645_vm3 = vcmask (!%p365_p3), 1041408  }
   0xa   : > { %v2395_v63 = vand.u32 (!%p365_p3), 4294901760, %v634_v59  ;;  %v2403_v3 = vand.u32 (!%p365_p3), 4294901760, %v637_v62  ;;  %vm1275_vm4 = vcmask (!%p365_p3), 261120  }
   0xb   : > { %v534_v40 = vunpack.c.0.s8 (!%p365_p3), %v533_v30 }
   0xc   : > { %v2401_v2 = vsub.f32 (!%p365_p3), %v634_v59, %v2395_v63 }
   0xd   : > { %610 = vperm.xlu0 (!%p365_p3), %2244, %v597_v4   ;;  %620 = vperm.xlu1 (!%p365_p3), %2245, %v599_v7   ;;  %v537_v51 = vsub.s32 (!%p365_p3), %v534_v40, %v2384_v41  ;;  %v640_v4 = vsel (!%p365_p3), %vm632_vm1, %v594_v1, 0  ;;  %v2411_v7 = vsub.f32 (!%p365_p3), %v637_v62, %v2403_v3 }
   0xe   : > { %s2572_s30 = smov (!%p445_p4, %s2260_s30), 1 }
   0xf   : > { %s2349_s17 = sshll.u32 %s2572_s30, 3 }
  0x10   : > { %s452_s20 = scalar_lea.vmem %s2557_s0, %s2349_s17  ;;  %s462_s23 = scalar_lea.vmem %s2558_s1, %s2349_s17 }
  0x11   : > { %s472_s28 = scalar_lea.vmem %s2559_s2, %s2349_s17  ;;  %s482_s13 = scalar_lea.vmem %s2560_s3, %s2349_s17  ;;  %v504_v5 = vld [vmem:[%s452_s20] sm:$0xff]  ;;  %1272 = vperm.xlu0 %2244, %v601_v14  }
  0x12   : > { %v505_v6 = vld [vmem:[%s462_s23] sm:$0xff]  ;;  %s502_s16 = scalar_lea.vmem %s2566_s9, %s2349_s17 }
  0x13   : > { %v2373_v8 = vld [vmem:[%s472_s28] sm:$0xff] }
  0x14   : > { %v2375_v9 = vld [vmem:[%s482_s13] sm:$0xff]  ;;  %v508_v10 = vmul.f32 %v2373_v8, %v504_v5  ;;  %v552_v12 = vmul.f32 %v2373_v8, %v505_v6  ;;  %s492_s13 = scalar_lea.vmem %s2565_s8, %s2349_s17 }
  0x15   : > { %v509_v11 = vmul.f32 %v2375_v9, %v505_v6  ;;  %v553_v13 = vmul.f32 %v2375_v9, %v504_v5  ;;  %v719_v5 = vand.u32 4294901760, %v2401_v2  ;;  %v595_v6 = vld [vmem:[%s2561_s4 + $0x18] sm:$0xff] }
  0x17   : > { %v510_v15 = vadd.f32 %v509_v11, %v508_v10  ;;  %v554_v16 = vsub.f32 %v552_v12, %v553_v13  ;;  %v2413_v10 = vand.u32 4294901760, %v640_v4  ;;  %v643_v12 = vsel %vm632_vm1, %v595_v6, 0 }
  0x18   : > { %v730_v13 = vand.u32 4294901760, %v2411_v7  ;;  %v720_v14 = vsub.f32 %v2401_v2, %v719_v5 }
  0x19   : > { %v512_v17 = vcombine.high %v510_v15, %v510_v15  ;;  %v515_v18 = vsel %vm514_vm0, %v510_v15, 0.0  ;;  %v556_v19 = vcombine.high %v554_v16, %v554_v16  ;;  %v558_v20 = vsel %vm514_vm0, %v554_v16, 0.0 }
  0x1a   : > { %v516_v21 = vrot.slane %v515_v18, 4  ;;  %v559_v22 = vrot.slane %v558_v20, 4 }
  0x1b   : > { %v522_v23 = vsel %vm514_vm0, %v512_v17, 0.0  ;;  %v565_v24 = vsel %vm514_vm0, %v556_v19, 0.0  ;;  %v740_v19 = vsub.f32 %v640_v4, %v2413_v10 }
  0x1c   : > { %v517_v25 = vadd.f32 %v516_v21, %v515_v18  ;;  %v523_v26 = vrot.slane %v522_v23, 4  ;;  %v560_v27 = vadd.f32 %v559_v22, %v558_v20  ;;  %v566_v28 = vrot.slane %v565_v24, 4 }
  0x1d   : > { %v2423_v20 = vand.u32 4294901760, %v643_v12 }
  0x1e   : > { %v518_v32 = vrot.slane %v517_v25, 2  ;;  %v524_v33 = vadd.f32 %v523_v26, %v522_v23  ;;  %v561_v34 = vrot.slane %v560_v27, 2  ;;  %v567_v35 = vadd.f32 %v566_v28, %v565_v24 }
  0x1f   : > { %v721_v23 = vand.u32 4294901760, %v720_v14  ;;  %v731_v24 = vsub.f32 %v2411_v7, %v730_v13  ;;  %v751_v30 = vsub.f32 %v643_v12, %v2423_v20 }
  0x20   : > { %v519_v36 = vadd.f32 %v518_v32, %v517_v25  ;;  %v525_v37 = vrot.slane %v524_v33, 2  ;;  %v562_v38 = vadd.f32 %v561_v34, %v560_v27  ;;  %v568_v39 = vrot.slane %v567_v35, 2 }
  0x21   : > { %v741_v27 = vand.u32 4294901760, %v740_v19  ;;  %v732_v31 = vand.u32 4294901760, %v731_v24 }
  0x22   : > { %v520_v42 = vrot.slane %v519_v36, 1  ;;  %v526_v43 = vadd.f32 %v525_v37, %v524_v33  ;;  %v563_v44 = vrot.slane %v562_v38, 1  ;;  %v569_v45 = vadd.f32 %v568_v39, %v567_v35 }
  0x23   : > { %v752_v33 = vand.u32 4294901760, %v751_v30  ;;  %v742_v34 = vsub.f32 %v740_v19, %v741_v27 }
  0x24   : > { %v521_v46 = vadd.f32 %v520_v42, %v519_v36  ;;  %v527_v47 = vrot.slane %v526_v43, 1  ;;  %v564_v48 = vadd.f32 %v563_v44, %v562_v38  ;;  %v570_v49 = vrot.slane %v569_v45, 1 }
  0x25   : > { %v743_v37 = vand.u32 4294901760, %v742_v34  ;;  %v753_v38 = vsub.f32 %v751_v30, %v752_v33 }
  0x26   : > { %v528_v50 = vadd.f32 %v527_v47, %v526_v43  ;;  %v571_v52 = vadd.f32 %v570_v49, %v569_v45  ;;  %v600_v49 = vld [vmem:[%s2563_s6] sm:$0x3] }
  0x27   : > { %v754_v39 = vand.u32 4294901760, %v753_v38 }
  0x28   : > { %v531_v54 = vcombine.low %v521_v46, %v528_v50  ;;  %v574_v55 = vcombine.low %v564_v48, %v571_v52 }
  0x2a   : > { %v538_v57 = vrot.slane %v531_v54, %v537_v51  ;;  %v581_v58 = vrot.slane %v574_v55, %v537_v51 }
  0x2c   : > { %v545_v60 = vrot.slane %v538_v57, %v537_v51  ;;  %v588_v61 = vrot.slane %v581_v58, %v537_v51  ;;  %v1277_v51 = vsel %vm1275_vm4, %v600_v49, 0 }
  0x2d   : > { %v2477_v52 = vand.u32 4294901760, %v1277_v51 }
  0x2e   : > { %551 = vst.msk [vmem:[#allocation2] ss:$2 sm:$0x3] %vm549_vm2, %v545_v60  ;;  %591 = vst.msk [vmem:[#allocation2 + $0x1] ss:$2 sm:$0x3] %vm549_vm2, %v588_v61 }
  0x2f   : > { %v2480_v58 = vsub.f32 %v1277_v51, %v2477_v52 }
  0x31   : > { %v1354_v4 = vand.u32 4294901760, %v2480_v58 }
  0x35   : > { %v2097_v11 = vld.sshfl [vmem:[#allocation2] sm:$0x33 pattern:$0x76325410] }
  0x36   : > { %v631_v15 = vcombine.high %v2097_v11, %v2097_v11  ;;  %v646_v16 = vsel %vm645_vm3, %v2097_v11, 0 }
  0x37   : > { %v2420_v17 = vand.u32 4294901760, %v646_v16 }
  0x38   : > { %v648_v18 = vsel %vm645_vm3, %v631_v15, 0 }
  0x39   : > { %v650_v21 = vand.u32 4294901760, %v648_v18  ;;  %v768_v22 = vsub.f32 %v646_v16, %v2420_v17 }
  0x3b   : > { %v762_v25 = vsub.f32 %v648_v18, %v650_v21  ;;  %v769_v26 = vand.u32 4294901760, %v768_v22  ;;  %651 = vmatprep.subr.mxu1 %v650_v21 }
  0x3c   : > { %653 = vmatpush1.msra.mxu1 %v2420_v17 }
  0x3d   : > { %v763_v28 = vand.u32 4294901760, %v762_v25  ;;  %v770_v29 = vsub.f32 %v768_v22, %v769_v26  ;;  %722 = vmatmul.mubr.f32.vlgmr.msra.gmra.mrb[0].mxu1 %v721_v23 }
  0x3e   : > { %727 = vmatprep.mubr.f32.mxu1 %v2270_v0 }
  0x3f   : > { %v764_v32 = vsub.f32 %v762_v25, %v763_v28  ;;  %v771_v35 = vand.u32 4294901760, %v770_v29 }
  0x41   : > { %v765_v36 = vand.u32 4294901760, %v764_v32  ;;  %733 = vmatmul.mubr.f32.gmra.mrb[2].mxu1 %v732_v31 }
  0x42   : > { %738 = vmatprep.mubr.f32.mxu1 %v2270_v0 }
  0x43   : > { %766 = vmatprep.subr.mxu0 %v765_v36  ;;  %2155 = vmatprep.subr.mxu1 %v765_v36 }
  0x44   : > { %772 = vmatpush1.msra.mxu0 %v771_v35  ;;  %2156 = vmatpush1.msra.mxu1 %v771_v35 }
  0x45   : > { %837 = vmatmul.mubr.f32.vlgmr.msra.gmra.mrb[0].mxu0 %v2395_v63  ;;  %866 = vmatprep.subr.mxu0 %v762_v25 }
  0x46   : > { %869 = vmatpush1.msra.mxu0 %v768_v22  ;;  %932 = vmatprep.mubr.f32.mxu0 %v2270_v0 }
  0x47   : > { %966 = vmatprep.subr.mxu0 %v650_v21  ;;  %744 = vmatmul.mubr.f32.gmra.mrb[4].mxu1 %v743_v37 }
  0x48   : > { %749 = vmatprep.mubr.f32.mxu1 %v2270_v0 }
  0x4b   : > { %755 = vmatmul.mubr.f32.gmra.mrb[6].mxu1 %v754_v39 }
  0x4c   : > { %842 = vmatprep.mubr.f32.mxu1 %v2270_v0 }
  0x4d   : > { %935 = vmatmul.mubr.f32.vlgmr.msra.gmra.mrb[0].mxu0 %v2401_v2 }
  0x4e   : > { %940 = vmatprep.mubr.f32.mxu0 %v2270_v0  ;;  %968 = vmatpush1.msra.mxu0 %v2420_v17 }
  0x4f   : > { %1071 = vmatprep.subr.mxu0 %v763_v28  ;;  %844 = vmatmul.mubr.f32.vlgmr.msra.gmra.mrb[2].mxu1 %v2403_v3 }
  0x50   : > { %849 = vmatprep.mubr.f32.mxu1 %v2270_v0 }
  0x51   : > { %943 = vmatmul.mubr.f32.gmra.mrb[2].mxu0 %v2411_v7 }
  0x52   : > { %948 = vmatprep.mubr.f32.mxu0 %v2270_v0 }
  0x53   : > { %851 = vmatmul.mubr.f32.gmra.mrb[4].mxu1 %v2413_v10 }
  0x54   : > { %856 = vmatprep.mubr.f32.mxu1 %v2270_v0 }
  0x55   : > { %951 = vmatmul.mubr.f32.gmra.mrb[4].mxu0 %v740_v19 }
  0x56   : > { %956 = vmatprep.mubr.f32.mxu0 %v2270_v0 }
  0x57   : > { %858 = vmatmul.mubr.f32.gmra.mrb[6].mxu1 %v2423_v20 }
  0x58   : > { %1351 = vmatprep.mubr.f32.mxu1 %v2270_v0 }
  0x59   : > { %959 = vmatmul.mubr.f32.gmra.mrb[6].mxu0 %v751_v30 }
  0x5a   : > { %1031 = vmatprep.mubr.f32.mxu0 %v2270_v0 }
  0x5d   : > { %1035 = vmatmul.mubr.f32.vlgmr.msra.gmra.mrb[0].mxu0 %v719_v5 }
  0x5e   : > { %1040 = vmatprep.mubr.f32.mxu0 %v2270_v0  ;;  %1075 = vmatpush1.msra.mxu0 %v769_v26 }
  0x5f   : > { %1168 = vmatprep.subr.mxu0 %v650_v21 }
  0x61   : > { %1044 = vmatmul.mubr.f32.gmra.mrb[2].mxu0 %v730_v13 }
  0x62   : > { %1049 = vmatprep.mubr.f32.mxu0 %v2270_v0 }
  0x65   : > { %1053 = vmatmul.mubr.f32.gmra.mrb[4].mxu0 %v741_v27 }
  0x66   : > { %1058 = vmatprep.mubr.f32.mxu0 %v2270_v0 }
  0x69   : > { %1062 = vmatmul.mubr.f32.gmra.mrb[6].mxu0 %v752_v33 }
  0x6a   : > { %1138 = vmatprep.mubr.f32.mxu0 %v2270_v0 }
  0x6d   : > { %1140 = vmatmul.mubr.f32.vlgmr.msra.gmra.mrb[0].mxu0 %v2395_v63 }
  0x6e   : > { %1145 = vmatprep.mubr.f32.mxu0 %v2270_v0  ;;  %1170 = vmatpush1.msra.mxu0 %v2420_v17 }
  0x71   : > { %1147 = vmatmul.mubr.f32.gmra.mrb[2].mxu0 %v2403_v3 }
  0x72   : > { %1152 = vmatprep.mubr.f32.mxu0 %v2270_v0 }
  0x75   : > { %1154 = vmatmul.mubr.f32.gmra.mrb[4].mxu0 %v2413_v10 }
  0x76   : > { %1159 = vmatprep.mubr.f32.mxu0 %v2270_v0 }
  0x79   : > { %1161 = vmatmul.mubr.f32.gmra.mrb[6].mxu0 %v2423_v20 }
  0x7a   : > { %1233 = vmatprep.mubr.f32.mxu0 %v2270_v0 }
  0x7d   : > { %1235 = vmatmul.mubr.f32.vlgmr.msra.gmra.mrb[0].mxu0 %v2395_v63 }
  0x7e   : > { %1240 = vmatprep.mubr.f32.mxu0 %v2270_v0 }
  0x81   : > { %1242 = vmatmul.mubr.f32.gmra.mrb[2].mxu0 %v2403_v3 }
  0x82   : > { %1247 = vmatprep.mubr.f32.mxu0 %v2270_v0 }
  0x85   : > { %1249 = vmatmul.mubr.f32.gmra.mrb[4].mxu0 %v2413_v10 }
  0x86   : > { %1254 = vmatprep.mubr.f32.mxu0 %v2270_v0 }
  0x88   : > { %v606_v50 = vpop.permute.xlu0 %605  ;;  %v616_v56 = vpop.permute.xlu1 %615 }
  0x89   : > { %1256 = vmatmul.mubr.f32.gmra.mrb[6].mxu0 %v2423_v20  ;;  %v2490_v20 = vsub.f32 %v2480_v58, %v1354_v4 }
  0x8c   : > { %v611_v54 = vpop.permute.xlu0 %610  ;;  %v621_v10 = vpop.permute.xlu1 %620 }
 0x110   : > { %v723_v40 = vpop.f32.mrb[0].mxu1 }
 0x111   : > { %v725_v42 = vpop.f32.mrb[1].mxu1  ;;  %v724_v53 = vadd.f32 %v723_v40, %v606_v50 }
 0x112   : > { %v726_v55 = vadd.f32 %v725_v42, %v606_v50 }
 0x122   : > { %v845_v43 = vpop.f32.mrb[2].mxu1 }
 0x123   : > { %v847_v44 = vpop.f32.mrb[3].mxu1  ;;  %v2161_v62 = vadd.f32 %v845_v43, %v611_v54 }
 0x124   : > { %v2163_v1 = vadd.f32 %v847_v44, %v611_v54 }
 0x126   : > { %v852_v45 = vpop.f32.mrb[4].mxu1 }
 0x127   : > { %v854_v46 = vpop.f32.mrb[5].mxu1  ;;  %v2165_v13 = vadd.f32 %v852_v45, %v616_v56 }
 0x128   : > { %v2167_v16 = vadd.f32 %v854_v46, %v616_v56 }
 0x12a   : > { %v859_v47 = vpop.f32.mrb[6].mxu1 }
 0x12b   : > { %v861_v48 = vpop.f32.mrb[7].mxu1  ;;  %v2169_v21 = vadd.f32 %v859_v47, %v621_v10 }
 0x12c   : > { %v2171_v26 = vadd.f32 %v861_v48, %v621_v10 }
 0x150   : > { %v1236_v57 = vpop.f32.mrb[0].mxu0 }
 0x151   : > { %v2158_v59 = vadd.f32 %v1236_v57, %v724_v53  ;;  %v1238_v60 = vpop.f32.mrb[1].mxu0 }
 0x152   : > { %v2160_v61 = vadd.f32 %v1238_v60, %v726_v55 }
 0x153   : > { %v1262_v63 = vmax.f32 %v2158_v59, 0.0 }
 0x154   : > { %v1263_v2 = vmax.f32 %v2160_v61, 0.0  ;;  %v1243_v3 = vpop.f32.mrb[2].mxu0 }
 0x155   : > { %v1281_v5 = vand.u32 4294901760, %v1262_v63  ;;  %v2162_v6 = vadd.f32 %v2161_v62, %v1243_v3  ;;  %v1245_v7 = vpop.f32.mrb[3].mxu0 }
 0x156   : > { %v1279_v11 = vand.u32 4294901760, %v1263_v2  ;;  %v2164_v12 = vadd.f32 %v2163_v1, %v1245_v7 }
 0x157   : > { %v2483_v14 = vsub.f32 %v1262_v63, %v1281_v5  ;;  %v1264_v15 = vmax.f32 %v2162_v6, 0.0 }
 0x158   : > { %v2485_v17 = vsub.f32 %v1263_v2, %v1279_v11  ;;  %v1265_v18 = vmax.f32 %v2164_v12, 0.0  ;;  %v1250_v19 = vpop.f32.mrb[4].mxu0 }
 0x159   : > { %v1371_v22 = vand.u32 4294901760, %v2483_v14  ;;  %v1285_v23 = vand.u32 4294901760, %v1264_v15  ;;  %v2166_v24 = vadd.f32 %v2165_v13, %v1250_v19  ;;  %v1252_v25 = vpop.f32.mrb[5].mxu0 }
 0x15a   : > { %v1365_v27 = vand.u32 4294901760, %v2485_v17  ;;  %v1283_v28 = vand.u32 4294901760, %v1265_v18  ;;  %v2168_v29 = vadd.f32 %v2167_v16, %v1252_v25 }
 0x15b   : > { %v1372_v30 = vsub.f32 %v2483_v14, %v1371_v22  ;;  %v2495_v31 = vpack.c.bf16 %v1285_v23, %v1281_v5  ;;  %v2497_v32 = vsub.f32 %v1264_v15, %v1285_v23  ;;  %v1266_v33 = vmax.f32 %v2166_v24, 0.0 }
 0x15c   : > { %v2499_v34 = vsub.f32 %v1265_v18, %v1283_v28  ;;  %v1267_v35 = vmax.f32 %v2168_v29, 0.0  ;;  %v1257_v36 = vpop.f32.mrb[6].mxu0  ;;  %v2501_v37 = vpack.c.bf16 %v1283_v28, %v1279_v11  ;;  %v1366_v38 = vsub.f32 %v2485_v17, %v1365_v27 }
 0x15d   : > { %v1373_v39 = vand.u32 4294901760, %v1372_v30  ;;  %v1383_v40 = vand.u32 4294901760, %v2497_v32  ;;  %v1289_v42 = vand.u32 4294901760, %v1266_v33  ;;  %v2170_v43 = vadd.f32 %v2169_v21, %v1257_v36  ;;  %v1259_v44 = vpop.f32.mrb[7].mxu0 }
 0x15e   : > { %v1377_v45 = vand.u32 4294901760, %v2499_v34  ;;  %v1287_v46 = vand.u32 4294901760, %v1267_v35  ;;  %v2172_v47 = vadd.f32 %v2171_v26, %v1259_v44  ;;  %2108 = vmatprep.subr.bf16.mxu1 %v2501_v37  ;;  %v1367_v48 = vand.u32 4294901760, %v1366_v38 }
 0x15f   : > { %v1384_v49 = vsub.f32 %v2497_v32, %v1383_v40  ;;  %v1394_v50 = vsub.f32 %v1266_v33, %v1289_v42  ;;  %v1268_v51 = vmax.f32 %v2170_v43, 0.0  ;;  %2110 = vmatpush1.bf16.msra.mxu1 %v2495_v31  ;;  %v2123_v53 = vpack.c.bf16 %v2499_v34, %v2485_v17 }
 0x160   : > { %v1388_v54 = vsub.f32 %v1267_v35, %v1287_v46  ;;  %v1269_v55 = vmax.f32 %v2172_v47, 0.0  ;;  %v1378_v56 = vsub.f32 %v2499_v34, %v1377_v45  ;;  %v2125_v57 = vpack.c.bf16 %v2497_v32, %v2483_v14 }
 0x161   : > { %v1385_v59 = vand.u32 4294901760, %v1384_v49  ;;  %v1395_v60 = vand.u32 4294901760, %v1394_v50  ;;  %v1293_v61 = vand.u32 4294901760, %v1268_v51  ;;  %v2139_v62 = vpack.c.bf16 %v1377_v45, %v1365_v27 }
 0x162   : > { %v1389_v63 = vand.u32 4294901760, %v1388_v54  ;;  %v1291_v1 = vand.u32 4294901760, %v1269_v55  ;;  %v1379_v2 = vand.u32 4294901760, %v1378_v56  ;;  %v2141_v3 = vpack.c.bf16 %v1383_v40, %v1371_v22 }
 0x163   : > { %v2113_v5 = vpack.c.bf16 %v1293_v61, %v1289_v42  ;;  %v1406_v6 = vsub.f32 %v1268_v51, %v1293_v61  ;;  %v2117_v7 = vpack.c.bf16 %v1385_v59, %v1373_v39  ;;  %v1396_v13 = vsub.f32 %v1394_v50, %v1395_v60 }
 0x164   : > { %v1400_v10 = vsub.f32 %v1269_v55, %v1291_v1  ;;  %v2111_v11 = vpack.c.bf16 %v1291_v1, %v1287_v46  ;;  %v2115_v12 = vpack.c.bf16 %v1379_v2, %v1367_v48  ;;  %v1356_v14 = vand.u32 4294901760, %v2490_v20  ;;  %v1273_v20 = vpop.permute.xlu0 %1272 }
 0x165   : > { %v1407_v15 = vand.u32 4294901760, %v1406_v6  ;;  %v2129_v16 = vpack.c.bf16 %v1406_v6, %v1394_v50  ;;  %v1390_v18 = vsub.f32 %v1388_v54, %v1389_v63  ;;  %v1397_v25 = vand.u32 4294901760, %v1396_v13 }
 0x166   : > { %v1401_v17 = vand.u32 4294901760, %v1400_v10  ;;  %2112 = vmatprep.subr.bf16.mxu1 %v2111_v11  ;;  %v2127_v19 = vpack.c.bf16 %v1400_v10, %v1388_v54  ;;  %v1842_v35 = vsub.s32 0, %v2384_v41  ;;  %v1846_v36 = vsub.s32 1, %v2384_v41 }
 0x167   : > { %v1408_v21 = vsub.f32 %v1406_v6, %v1407_v15  ;;  %2114 = vmatpush1.bf16.msra.mxu1 %v2113_v5  ;;  %v2145_v23 = vpack.c.bf16 %v1407_v15, %v1395_v60  ;;  %v1391_v27 = vand.u32 4294901760, %v1390_v18 }
 0x168   : > { %2116 = vmatprep.subr.bf16.mxu1 %v2115_v12  ;;  %v1402_v22 = vsub.f32 %v1400_v10, %v1401_v17  ;;  %v2143_v24 = vpack.c.bf16 %v1401_v17, %v1389_v63 }
 0x169   : > { %v1409_v26 = vand.u32 4294901760, %v1408_v21 }
 0x16a   : > { %1357 = vmatmul.mubr.f32.vlgmr.msra.gmra.mrb[8].mxu1 %v1356_v14  ;;  %v1403_v28 = vand.u32 4294901760, %v1402_v22 }
 0x16b   : > { %2118 = vmatpush1.bf16.msra.mxu1 %v2117_v7  ;;  %v2121_v29 = vpack.c.bf16 %v1409_v26, %v1397_v25  ;;  %1467 = vmatprep.mubr.f32.mxu1 %v2270_v0 }
 0x16c   : > { %v2119_v30 = vpack.c.bf16 %v1403_v28, %v1391_v27 }
 0x16e   : > { %2120 = vmatprep.subr.bf16.mxu1 %v2119_v30 }
 0x16f   : > { %2122 = vmatpush1.bf16.msra.mxu1 %v2121_v29 }
 0x170   : > { %2124 = vmatprep.subr.bf16.mxu1 %v2123_v53 }
 0x172   : > { %1469 = vmatmul.mubr.f32.vlgmr.msra.gmra.mrb[8].mxu1 %v2477_v52 }
 0x173   : > { %2126 = vmatpush1.bf16.msra.mxu1 %v2125_v57  ;;  %1555 = vmatprep.mubr.f32.mxu1 %v2270_v0 }
 0x174   : > { %2128 = vmatprep.subr.bf16.mxu1 %v2127_v19 }
 0x177   : > { %2130 = vmatpush1.bf16.msra.mxu1 %v2129_v16 }
 0x178   : > { %2132 = vmatprep.subr.bf16.mxu1 %v2501_v37 }
 0x17a   : > { %1558 = vmatmul.mubr.f32.vlgmr.msra.gmra.mrb[8].mxu1 %v2480_v58 }
 0x17b   : > { %2134 = vmatpush1.bf16.msra.mxu1 %v2495_v31  ;;  %1636 = vmatprep.mubr.f32.mxu1 %v2270_v0 }
 0x17c   : > { %2136 = vmatprep.subr.bf16.mxu1 %v2111_v11 }
 0x17f   : > { %2138 = vmatpush1.bf16.msra.mxu1 %v2113_v5 }
 0x180   : > { %2140 = vmatprep.subr.bf16.mxu1 %v2139_v62 }
 0x182   : > { %1640 = vmatmul.mubr.f32.vlgmr.msra.gmra.mrb[8].mxu1 %v1354_v4 }
 0x183   : > { %2142 = vmatpush1.bf16.msra.mxu1 %v2141_v3  ;;  %1734 = vmatprep.mubr.f32.mxu1 %v2270_v0 }
 0x184   : > { %2144 = vmatprep.subr.bf16.mxu1 %v2143_v24 }
 0x187   : > { %2146 = vmatpush1.bf16.msra.mxu1 %v2145_v23 }
 0x188   : > { %2148 = vmatprep.subr.bf16.mxu1 %v2501_v37 }
 0x18a   : > { %1736 = vmatmul.mubr.f32.vlgmr.msra.gmra.mrb[8].mxu1 %v2477_v52 }
 0x18b   : > { %2150 = vmatpush1.bf16.msra.mxu1 %v2495_v31  ;;  %1814 = vmatprep.mubr.f32.mxu1 %v2270_v0  ;;  %v1851_v31 = vcombine.high %v2373_v8, %v2373_v8  ;;  %v1867_v0 = vcombine.high %v2375_v9, %v2375_v9 }
 0x18c   : > { %2152 = vmatprep.subr.bf16.mxu1 %v2111_v11 }
 0x18f   : > { %2154 = vmatpush1.bf16.msra.mxu1 %v2113_v5 }
 0x192   : > { %1816 = vmatmul.mubr.f32.vlgmr.msra.gmra.mrb[8].mxu1 %v2477_v52 }
 0x265   : > { %v1817_v58 = vpop.f32.mrb[8].mxu1 }
 0x266   : > { %v2173_v4 = vadd.f32 %v1817_v58, %v1273_v20  ;;  %v1819_v32 = vpop.f32.mrb[9].mxu1 }
 0x267   : > { %v2174_v33 = vadd.f32 %v1819_v32, %v1273_v20 }
 0x269   : > { %v1824_v34 = vcombine.low %v2173_v4, %v2174_v33 }
 0x26b   : > { %2098 = vst.sshfl [vmem:[#allocation3] sm:$0x33 pattern:$0x76325410] %v1824_v34 }
 0x272   : > { %v1834_v37 = vld [vmem:[#allocation3] ss:$2 sm:$0x3]  ;;  %v1836_v52 = vld [vmem:[#allocation3 + $0x1] ss:$2 sm:$0x3] }
 0x273   : > { %v1843_v38 = vrot.slane %v1834_v37, %v1842_v35  ;;  %v1847_v39 = vrot.slane %v1834_v37, %v1846_v36  ;;  %v1859_v40 = vrot.slane %v1836_v52, %v1842_v35  ;;  %v1863_v42 = vrot.slane %v1836_v52, %v1846_v36 }
 0x275   : > { %v1853_v43 = vmul.f32 %v1843_v38, %v2373_v8  ;;  %v1854_v44 = vmul.f32 %v1851_v31, %v1847_v39  ;;  %v1869_v45 = vmul.f32 %v1859_v40, %v2375_v9  ;;  %v1870_v41 = vmul.f32 %v1867_v0, %v1863_v42 }
 0x276   : > { %v1878_v46 = vmul.f32 %v1843_v38, %v2375_v9  ;;  %v1879_v47 = vmul.f32 %v1867_v0, %v1847_v39  ;;  %v1880_v48 = vmul.f32 %v1859_v40, %v2373_v8  ;;  %v1881_v49 = vmul.f32 %v1863_v42, %v1851_v31 }
 0x277   : > { %v1871_v50 = vsub.f32 %v1853_v43, %v1869_v45  ;;  %v1872_v51 = vsub.f32 %v1854_v44, %v1870_v41 }
 0x278   : > { %v1882_v53 = vadd.f32 %v1880_v48, %v1878_v46  ;;  %v1883_v54 = vadd.f32 %v1881_v49, %v1879_v47 }
 0x279   : > { %v1875_v55 = vcombine.low %v1871_v50, %v1872_v51 }
 0x27a   : > { %v1886_v56 = vcombine.low %v1882_v53, %v1883_v54 }
 0x27b   : > { %1877 = vst [vmem:[%s492_s13] sm:$0xff] %v1875_v55 }
 0x27c   : > { %1888 = vst [vmem:[%s502_s16] sm:$0xff] %v1886_v56 }
 0x27d PF: > { %s20_s11 = sadd.s32 1, %s2268_s11   ;;  %s2567_s30 = smov %s2264_s10 }
 0x27e   : > { %p17_p5 = scmp.ge.s32.totalorder %s20_s11, 4   ;;  %s2568_s10 = smov %s2570_s12 }
 0x280   :  { %19 = sbr.rel (!%p17_p5) target bundleno = 2 (0x2), region = 105 }

</bundles_post_ra>
